<compile_context>
chip_gen: v7x
topology: tpu7x:2x2x1
jax: 0.10.0
libtpu: 0.0.40
codegen_flags: <defaults>
</compile_context>

<pallas_src>
import jax
import jax.numpy as jnp
from jax import lax
from jax.experimental import pallas as pl
from jax.experimental.pallas import tpu as pltpu

C = 116          # logical channel / ROI count (Conv1d in/out channels)
CP = 128         # lane-padded channel dim
NEG_BIG = -1e30  # effectively -inf for the masked softmax columns


def attention_kernel(x_ref, z_ref, w1t_ref, b1_ref, w2t_ref, b2_ref, o_ref):
    # x_ref : (TB, CP, CP) bf16  -- X, zero padded beyond row/col 116
    # z_ref : (TB, M,  CP) bf16  -- Z, zero padded beyond col 116
    # w1t/w2t : (CP, CP) bf16    -- already transposed (W.T), zero padded
    # b1/b2 : (1, CP) f32        -- zero padded
    x = x_ref[...]
    z = z_ref[...]
    w1t = w1t_ref[...]
    w2t = w2t_ref[...]
    b1 = b1_ref[...]
    b2 = b2_ref[...]

    # Q = X @ W1^T + b1   (batched over TB; padded channels of W/b are zero)
    q = lax.dot_general(x, w1t, (((2,), (0,)), ((), ())),
                        preferred_element_type=jnp.float32) + b1        # (TB, CP, CP) f32

    # S = Q @ Q^T : contract the channel axis directly (no explicit transpose)
    qb = q.astype(jnp.bfloat16)
    s = lax.dot_general(qb, qb, (((2,), (2,)), ((0,), (0,))),
                        preferred_element_type=jnp.float32)             # (TB, CP, CP)

    # Mask the 12 padded key columns, then numerically-stable softmax (f32).
    col = lax.broadcasted_iota(jnp.int32, (CP, CP), 1)
    s = jnp.where(col < C, s, NEG_BIG)
    s = s - jnp.max(s, axis=-1, keepdims=True)
    p = jnp.exp(s)
    attn = p * pl.reciprocal(jnp.sum(p, axis=-1, keepdims=True), approx=True)

    # Vm = Z @ W2^T + b2 ; out = Vm @ attn^T  (padded Vm columns are zero)
    vm = lax.dot_general(z, w2t, (((2,), (0,)), ((), ())),
                         preferred_element_type=jnp.float32) + b2       # (TB, M, CP)
    out = lax.dot_general(vm.astype(jnp.bfloat16), attn.astype(jnp.bfloat16),
                          (((2,), (2,)), ((0,), (0,))),
                          preferred_element_type=jnp.float32)           # (TB, M, CP)
    o_ref[...] = out


def attention_forward(Z, X, params, perform_svd=False, block_b=None):
    """Pallas forward. Z: (B, M, 116), X: (B, 116, 116) -> out: (B, M, 116)."""
    # TODO(synk): perform_svd=True uses scipy.sparse.linalg.svds (truncated SVD, k=6)
    # + rank-k `restore` on CPU; no clean Pallas equivalent, only the dense path here.
    assert not perform_svd
    W1, b1, W2, b2 = params
    B, M, Cin = Z.shape
    assert Cin == C and X.shape == (B, C, C)
    assert W1.shape == (C, C) and W2.shape == (C, C)

    # Batch tiling: amortize per-step overhead but keep >=2 grid steps when B>=2
    # so both v7x TensorCores are used.
    if block_b is None:
        block_b = min(8, max(1, B // 2)) if B > 1 else 1
    n_blocks = pl.cdiv(B, block_b)
    Bp = n_blocks * block_b

    # Pad channel dims 116 -> 128 and batch to a block multiple (zero padding is
    # exact for the linear ops; the softmax masks the padded key columns).
    pC = CP - C
    Xp = jnp.pad(X.astype(jnp.float32), ((0, Bp - B), (0, pC), (0, pC)))
    Zp = jnp.pad(Z.astype(jnp.float32), ((0, Bp - B), (0, 0), (0, pC)))
    W1t = jnp.pad(W1.astype(jnp.float32).T, ((0, pC), (0, pC)))
    W2t = jnp.pad(W2.astype(jnp.float32).T, ((0, pC), (0, pC)))
    b1p = jnp.pad(b1.astype(jnp.float32).reshape(1, C), ((0, 0), (0, pC)))
    b2p = jnp.pad(b2.astype(jnp.float32).reshape(1, C), ((0, 0), (0, pC)))

    # bf16 operands for the MXU, f32 accumulation / softmax inside the kernel.
    Xb = Xp.astype(jnp.bfloat16)
    Zb = Zp.astype(jnp.bfloat16)
    W1tb = W1t.astype(jnp.bfloat16)
    W2tb = W2t.astype(jnp.bfloat16)

    flops = Bp * (4 * CP * CP * CP + 4 * M * CP * CP)
    bytes_accessed = ((Xb.size + Zb.size + W1tb.size + W2tb.size) * 2
                      + (b1p.size + b2p.size) * 4
                      + Bp * M * CP * 4)
    cost = pl.CostEstimate(flops=flops,
                           transcendentals=Bp * CP * CP,
                           bytes_accessed=bytes_accessed)

    out = pl.pallas_call(
        attention_kernel,
        out_shape=jax.ShapeDtypeStruct((Bp, M, CP), jnp.float32),
        grid=(n_blocks,),
        in_specs=[
            pl.BlockSpec((block_b, CP, CP), lambda i: (i, 0, 0)),   # X
            pl.BlockSpec((block_b, M, CP), lambda i: (i, 0, 0)),    # Z
            pl.BlockSpec((CP, CP), lambda i: (0, 0)),               # W1^T
            pl.BlockSpec((1, CP), lambda i: (0, 0)),                # b1
            pl.BlockSpec((CP, CP), lambda i: (0, 0)),               # W2^T
            pl.BlockSpec((1, CP), lambda i: (0, 0)),                # b2
        ],
        out_specs=pl.BlockSpec((block_b, M, CP), lambda i: (i, 0, 0)),
        compiler_params=pltpu.CompilerParams(
            dimension_semantics=("parallel",)),
        cost_estimate=cost,
    )(Xb, Zb, W1tb, b1p, W2tb, b2p)

    return out[:B, :, :C]


def reference_forward(Z, X, params):
    """Plain-JAX f32 reference (mirrors the PyTorch math)."""
    W1, b1, W2, b2 = params
    q = X @ W1.T + b1                                   # (B, 116, 116)
    s = jnp.einsum("blc,bkc->blk", q, q)                # Q @ Q^T
    attn = jax.nn.softmax(s, axis=-1)
    vm = Z @ W2.T + b2                                  # (B, M, 116)
    return jnp.einsum("bmj,blj->bml", vm, attn)         # Vm @ attn^T


if __name__ == "__main__":
    key = jax.random.PRNGKey(0)
    kx, kz, k1, k2, k3, k4 = jax.random.split(key, 6)

    B, M = 2, 16
    X = jax.random.normal(kx, (B, C, C), jnp.float32)   # feeds conv1 (116 channels)
    Z = jax.random.normal(kz, (B, M, C), jnp.float32)   # feeds conv2 (116 channels)

    # Conv1d(116, 116, kernel_size=1) parameters, PyTorch-style uniform init.
    scale = 1.0 / jnp.sqrt(jnp.float32(C))
    W1 = jax.random.uniform(k1, (C, C), jnp.float32, -scale, scale)
    b1 = jax.random.uniform(k2, (C,), jnp.float32, -scale, scale)
    W2 = jax.random.uniform(k3, (C, C), jnp.float32, -scale, scale)
    b2 = jax.random.uniform(k4, (C,), jnp.float32, -scale, scale)
    params = (W1, b1, W2, b2)

    out = attention_forward(Z, X, params, perform_svd=False)
    out = jax.block_until_ready(out)

    ref = reference_forward(Z, X, params)
    assert out.shape == (B, M, C)
    assert bool(jnp.all(jnp.isfinite(out)))
    max_err = float(jnp.max(jnp.abs(out - ref)))
    assert max_err < 5e-2, f"mismatch vs reference: max abs err {max_err}"

    print("KERNEL_OK")
</pallas_src>

<mosaic_0001>
module attributes {stable_mosaic.version = 11 : i64} {
  func.func @attention_kernel(%arg0: i32, %arg1: memref<1x128x128xbf16, #tpu.memory_space<vmem>>, %arg2: memref<1x16x128xbf16, #tpu.memory_space<vmem>>, %arg3: memref<128x128xbf16, #tpu.memory_space<vmem>>, %arg4: memref<1x128xf32, #tpu.memory_space<vmem>>, %arg5: memref<128x128xbf16, #tpu.memory_space<vmem>>, %arg6: memref<1x128xf32, #tpu.memory_space<vmem>>, %arg7: memref<1x16x128xf32, #tpu.memory_space<vmem>>) attributes {dimension_semantics = [#tpu.dimension_semantics<parallel>], iteration_bounds = array<i64: 2>, scalar_prefetch = 0 : i64, scratch_operands = 0 : i64, tpu.core_type = #tpu.core_type<tc>, window_params = [{transform_indices = @transform_0, window_bounds = array<i64: 1, 128, 128>}, {transform_indices = @transform_1, window_bounds = array<i64: 1, 16, 128>}, {pipeline_mode = #tpu.pipeline_mode<synchronous>, transform_indices = @transform_2, window_bounds = array<i64: 128, 128>}, {pipeline_mode = #tpu.pipeline_mode<synchronous>, transform_indices = @transform_3, window_bounds = array<i64: 1, 128>}, {pipeline_mode = #tpu.pipeline_mode<synchronous>, transform_indices = @transform_4, window_bounds = array<i64: 128, 128>}, {pipeline_mode = #tpu.pipeline_mode<synchronous>, transform_indices = @transform_5, window_bounds = array<i64: 1, 128>}, {transform_indices = @transform_6, window_bounds = array<i64: 1, 16, 128>}]} {
    %c0 = arith.constant 0 : index
    %c0_0 = arith.constant 0 : index
    %c0_1 = arith.constant 0 : index
    %0 = vector.load %arg1[%c0, %c0_0, %c0_1] : memref<1x128x128xbf16, #tpu.memory_space<vmem>>, vector<1x128x128xbf16>
    %c0_2 = arith.constant 0 : index
    %c0_3 = arith.constant 0 : index
    %c0_4 = arith.constant 0 : index
    %1 = vector.load %arg2[%c0_2, %c0_3, %c0_4] : memref<1x16x128xbf16, #tpu.memory_space<vmem>>, vector<1x16x128xbf16>
    %c0_5 = arith.constant 0 : index
    %c0_6 = arith.constant 0 : index
    %2 = vector.load %arg3[%c0_5, %c0_6] : memref<128x128xbf16, #tpu.memory_space<vmem>>, vector<128x128xbf16>
    %c0_7 = arith.constant 0 : index
    %c0_8 = arith.constant 0 : index
    %3 = vector.load %arg5[%c0_7, %c0_8] : memref<128x128xbf16, #tpu.memory_space<vmem>>, vector<128x128xbf16>
    %c0_9 = arith.constant 0 : index
    %c0_10 = arith.constant 0 : index
    %4 = vector.load %arg4[%c0_9, %c0_10] : memref<1x128xf32, #tpu.memory_space<vmem>>, vector<1x128xf32>
    %c0_11 = arith.constant 0 : index
    %c0_12 = arith.constant 0 : index
    %5 = vector.load %arg6[%c0_11, %c0_12] : memref<1x128xf32, #tpu.memory_space<vmem>>, vector<1x128xf32>
    %cst = arith.constant dense<0.000000e+00> : vector<1x128x128xf32>
    %6 = tpu.matmul %0, %2, %cst {dimension_numbers = #tpu.dot_dimension_numbers<[2], [0], [0, 1], [1], [0, 0, 0, 1, 1, 1], [], []>} : vector<1x128x128xbf16>, vector<128x128xbf16>, vector<1x128x128xf32> -> vector<1x128x128xf32>
    %7 = vector.shape_cast %4 : vector<1x128xf32> to vector<1x1x128xf32>
    %8 = vector.broadcast %7 : vector<1x1x128xf32> to vector<1x128x128xf32>
    %9 = arith.addf %6, %8 : vector<1x128x128xf32>
    %10 = arith.truncf %9 : vector<1x128x128xf32> to vector<1x128x128xbf16>
    %cst_13 = arith.constant dense<0.000000e+00> : vector<1x128x128xf32>
    %11 = tpu.matmul %10, %10, %cst_13 {dimension_numbers = #tpu.dot_dimension_numbers<[2], [2], [1], [1], [0, 0, 0, 1, 1, 1], [0], [0]>} : vector<1x128x128xbf16>, vector<1x128x128xbf16>, vector<1x128x128xf32> -> vector<1x128x128xf32>
    %12 = tpu.iota {dimensions = array<i32: 1>} : vector<128x128xi32>
    %c116_i32 = arith.constant 116 : i32
    %13 = vector.broadcast %c116_i32 : i32 to vector<128x128xi32>
    %14 = arith.cmpi slt, %12, %13 : vector<128x128xi32>
    %cst_14 = arith.constant -1.000000e+30 : f32
    %15 = vector.shape_cast %14 : vector<128x128xi1> to vector<1x128x128xi1>
    %16 = vector.broadcast %cst_14 : f32 to vector<1x128x128xf32>
    %17 = arith.select %15, %11, %16 : vector<1x128x128xi1>, vector<1x128x128xf32>
    %cst_15 = arith.constant dense<0xFF800000> : vector<1x128xf32>
    %18 = vector.multi_reduction <maximumf>, %17, %cst_15 [2] : vector<1x128x128xf32> to vector<1x128xf32>
    %19 = vector.shape_cast %18 : vector<1x128xf32> to vector<1x128x1xf32>
    %20 = vector.broadcast %19 : vector<1x128x1xf32> to vector<1x128x128xf32>
    %21 = arith.subf %17, %20 : vector<1x128x128xf32>
    %22 = math.exp %21 : vector<1x128x128xf32>
    %cst_16 = arith.constant dense<0.000000e+00> : vector<1x128xf32>
    %23 = vector.multi_reduction <add>, %22, %cst_16 [2] : vector<1x128x128xf32> to vector<1x128xf32>
    %24 = vector.shape_cast %23 : vector<1x128xf32> to vector<1x128x1xf32>
    %25 = tpu.reciprocal %24 {approx = true} : vector<1x128x1xf32> -> vector<1x128x1xf32>
    %26 = vector.broadcast %25 : vector<1x128x1xf32> to vector<1x128x128xf32>
    %27 = arith.mulf %22, %26 : vector<1x128x128xf32>
    %cst_17 = arith.constant dense<0.000000e+00> : vector<1x16x128xf32>
    %28 = tpu.matmul %1, %3, %cst_17 {dimension_numbers = #tpu.dot_dimension_numbers<[2], [0], [0, 1], [1], [0, 0, 0, 1, 1, 1], [], []>} : vector<1x16x128xbf16>, vector<128x128xbf16>, vector<1x16x128xf32> -> vector<1x16x128xf32>
    %29 = vector.shape_cast %5 : vector<1x128xf32> to vector<1x1x128xf32>
    %30 = vector.broadcast %29 : vector<1x1x128xf32> to vector<1x16x128xf32>
    %31 = arith.addf %28, %30 : vector<1x16x128xf32>
    %32 = arith.truncf %31 : vector<1x16x128xf32> to vector<1x16x128xbf16>
    %33 = arith.truncf %27 : vector<1x128x128xf32> to vector<1x128x128xbf16>
    %cst_18 = arith.constant dense<0.000000e+00> : vector<1x16x128xf32>
    %34 = tpu.matmul %32, %33, %cst_18 {dimension_numbers = #tpu.dot_dimension_numbers<[2], [2], [1], [1], [0, 0, 0, 1, 1, 1], [0], [0]>} : vector<1x16x128xbf16>, vector<1x128x128xbf16>, vector<1x16x128xf32> -> vector<1x16x128xf32>
    %c0_19 = arith.constant 0 : index
    %c0_20 = arith.constant 0 : index
    %c0_21 = arith.constant 0 : index
    %35 = vector.load %arg7[%c0_19, %c0_20, %c0_21] : memref<1x16x128xf32, #tpu.memory_space<vmem>>, vector<1x16x128xf32>
    tpu.vector_store %arg7[%c0_19, %c0_20, %c0_21], %34 {strides = array<i32>} : memref<1x16x128xf32, #tpu.memory_space<vmem>>, vector<1x16x128xf32>,
    return
  }
  func.func @transform_0(%arg0: i32) -> (i32, i32, i32) {
    %c0_i32 = arith.constant 0 : i32
    %c0_i32_0 = arith.constant 0 : i32
    %c0_i32_1 = arith.constant 0 : i32
    return %arg0, %c0_i32, %c0_i32_0 : i32, i32, i32
  }
  func.func @transform_1(%arg0: i32) -> (i32, i32, i32) {
    %c0_i32 = arith.constant 0 : i32
    %c0_i32_0 = arith.constant 0 : i32
    %c0_i32_1 = arith.constant 0 : i32
    return %arg0, %c0_i32, %c0_i32_0 : i32, i32, i32
  }
  func.func @transform_2(%arg0: i32) -> (i32, i32) {
    %c0_i32 = arith.constant 0 : i32
    %c0_i32_0 = arith.constant 0 : i32
    %c0_i32_1 = arith.constant 0 : i32
    return %c0_i32, %c0_i32_0 : i32, i32
  }
  func.func @transform_3(%arg0: i32) -> (i32, i32) {
    %c0_i32 = arith.constant 0 : i32
    %c0_i32_0 = arith.constant 0 : i32
    %c0_i32_1 = arith.constant 0 : i32
    return %c0_i32, %c0_i32_0 : i32, i32
  }
  func.func @transform_4(%arg0: i32) -> (i32, i32) {
    %c0_i32 = arith.constant 0 : i32
    %c0_i32_0 = arith.constant 0 : i32
    %c0_i32_1 = arith.constant 0 : i32
    return %c0_i32, %c0_i32_0 : i32, i32
  }
  func.func @transform_5(%arg0: i32) -> (i32, i32) {
    %c0_i32 = arith.constant 0 : i32
    %c0_i32_0 = arith.constant 0 : i32
    %c0_i32_1 = arith.constant 0 : i32
    return %c0_i32, %c0_i32_0 : i32, i32
  }
  func.func @transform_6(%arg0: i32) -> (i32, i32, i32) {
    %c0_i32 = arith.constant 0 : i32
    %c0_i32_0 = arith.constant 0 : i32
    %c0_i32_1 = arith.constant 0 : i32
    return %arg0, %c0_i32, %c0_i32_0 : i32, i32, i32
  }
}

</mosaic_0001>

<bundles_post_ra>
// kernel: tpu_custom_call.1
= control target key start
LH: loop header
LB: loop body
LE: loop exit
PB: predicated region body
PF: predicated region fallthrough
CT: control target
= control target key end

     0   :  { %s2246_s0 = inlined_call_operand.hbm [shape: bf16[2,128,128], index: 0, kind: input, shape index: {}]   ;;  %s2247_s1 = inlined_call_operand.hbm [shape: bf16[2,16,128], index: 1, kind: input, shape index: {}]   ;;  %s2248_s2 = inlined_call_operand.hbm [shape: bf16[128,128], index: 2, kind: input, shape index: {}]   ;;  %s2249_s3 = inlined_call_operand.vmem [shape: f32[1,128], index: 3, kind: input, shape index: {}]   ;;  %s2250_s4 = inlined_call_operand.hbm [shape: bf16[128,128], index: 4, kind: input, shape index: {}]   ;;  %s2251_s5 = inlined_call_operand.vmem [shape: f32[1,128], index: 5, kind: input, shape index: {}]   ;;  %s2252_s6 = inlined_call_operand.hbm [shape: f32[2,16,128], index: 6, kind: output, shape index: {}]  }
   0x1   :  { %2260 = sst [smem:[#allocation17_spill]] %s2246_s0 }
   0x2   :  { %2261 = sst [smem:[#allocation18_spill]] %s2248_s2 }
   0x3   :  { %2262 = sst [smem:[#allocation19_spill]] %s2250_s4 }
   0x4   :  { %11 = vsyncpa [#allocation3], 0 }
   0x5   :  { %13 = vsyncpa [#allocation3 + $0x1], 0 }
   0x6   :  { %14 = vsyncpa [#allocation6], 0 }
   0x7   :  { %16 = vsyncpa [#allocation6 + $0x1], 0 }
   0x8   :  { %17 = vsyncpa [#allocation9], 0 }
   0x9   :  { %18 = vsyncpa [#allocation4], 0 }
   0xa   :  { %20 = vsyncpa [#allocation4 + $0x1], 0  ;;  %s1756_s21 = smov 0   ;;  %s1758_s22 = smov 0  }
   0xb   :  { %s1760_s23 = smov 0   ;;  %s1762_s24 = smov 0  }
   0xc LB: > { %s1777_s25 = sadd.s32 4294967295, %s1708_s24   ;;  %s1141_s26 = sadd.s32 4294967294, %s1708_s24   ;;  %s1708_s24 = sphi %s1762_s24, %s2289_s24   ;;  %s1704_s23 = sphi %s1760_s23, %s2288_s23   ;;  %s1700_s22 = sphi %s1758_s22, %s2287_s22   ;;  %s1696_s21 = sphi %s1756_s21, %s2286_s21  }
   0xd   : > { %p46_p0 = scmp.ne.s32.totalorder %s1700_s22, %s1696_s21  ;;  %p2253_p1 = scmp.eq.s32.totalorder %s1777_s25, 0 }
   0xe   : > { %p186_p3 = scmp.eq.s32.totalorder %s1141_s26, 1  ;;  %p1142_p5 = scmp.ge.s32.totalorder %s1708_s24, 1 }
   0xf   : > { %p1786_p4 = por %p2253_p1, %p46_p0  ;;  %p193_p7 = scmp.lt.s32.totalorder %s1708_s24, 3 }
  0x10   : > { %p1791_p6 = por %p186_p3, %p46_p0  ;;  %s1710_s30 = smov [#allocation7]  }
  0x11   : > { %s2263_s27 = scalar_select %p1786_p4, 1, 0 }
  0x12   : > { %s2264_s28 = scalar_select %p1791_p6, 1, 0 }
  0x13   : > { %p1796_p8 = pnand %p1142_p5, %p193_p7  ;;  %s205_s7 = sshll.u32 %s1710_s30, 4  ;;  %s1800_s7 = int_to_ptr.vmem [resolvable:$true] %s205_s7 }
  0x14   : > { %s1711_s9 = smov [#allocation8]   ;;  %s2267_s2 = sld [smem:[#allocation18_spill]] }
  0x15   : > { %p1361_p9 = pneg %p1796_p8  ;;  %s221_s10 = sshll.u32 %s1711_s9, 4  ;;  %s1811_s10 = int_to_ptr.vmem [resolvable:$true] %s221_s10 }
  0x17   : > { %p1807_p11 = pnand %p1361_p9, %p2253_p1 }
  0x19   : > { %p1516_p13 = pneg %p1807_p11 }
  0x1a   : > { %s1514_s13 = scalar_lea.hbm %s2267_s2, 1024 }
  0x1b   : > { %p1515_p12 = scmp.ne.s32.totalorder %s2267_s2, %s1514_s13  ;;  %p1521_p5 = scmp.lt.u32.totalorder %s1514_s13, %s2267_s2 }
  0x1d   : > { %p1517_p0 = pnand %p1516_p13, %p1515_p12 }
  0x1f   : > { %p1518_p3 = pneg %p1517_p0 }
  0x21   : > { %p1523_p7 = pnand %p1521_p5, %p1518_p3 }
  0x23   : > { %1526 = shalt.err (!%p1523_p7)
}
  0x24   : > { %s1527_s18 = scalar_lea.vmem %s1800_s7, 1024  ;;  %p1535_p2 = scmp.lt.s32.totalorder %s1800_s7, %s1800_s7 }
  0x25   : > { %p1528_p9 = scmp.ne.s32.totalorder %s1800_s7, %s1527_s18  ;;  %p1536_p12 = scmp.lt.s32.totalorder %s1527_s18, %s1527_s18 }
  0x27   : > { %p1530_p10 = pnand %p1528_p9, %p1516_p13  ;;  %p1537_p0 = por %p1536_p12, %p1535_p2 }
  0x29   : > { %p1531_p1 = pneg %p1530_p10 }
  0x2b   : > { %p1538_p6 = pnand %p1537_p0, %p1531_p1 }
  0x2d   : > { %1541 = shalt.err (!%p1538_p6)
}
  0x2e   : > { %s2254_s19 = smov 64   ;;  %s2256_s20 = smov 4  }
  0x2f   : > { %1364 = dma.hbm_to_vmem [thread:$0]  (!%p1807_p11), %s2267_s2, 1024, %s1800_s7, [#allocation6], %s2254_s19, %s2254_s19, %s2256_s20  }
  0x30   : > { %s2268_s4 = sld [smem:[#allocation19_spill]] }
  0x36   : > { %s1542_s12 = scalar_lea.hbm %s2268_s4, 1024 }
  0x37   : > { %p1543_p1 = scmp.ne.s32.totalorder %s2268_s4, %s1542_s12  ;;  %p1549_p10 = scmp.lt.u32.totalorder %s1542_s12, %s2268_s4 }
  0x39   : > { %p1545_p2 = pnand %p1543_p1, %p1516_p13 }
  0x3b   : > { %p1546_p6 = pneg %p1545_p2 }
  0x3d   : > { %p1551_p3 = pnand %p1549_p10, %p1546_p6 }
  0x3f   : > { %1554 = shalt.err (!%p1551_p3)
}
  0x40   : > { %s1555_s7 = scalar_lea.vmem %s1811_s10, 1024  ;;  %p1563_p12 = scmp.lt.s32.totalorder %s1811_s10, %s1811_s10 }
  0x41   : > { %p1556_p5 = scmp.ne.s32.totalorder %s1811_s10, %s1555_s7  ;;  %p1564_p0 = scmp.lt.s32.totalorder %s1555_s7, %s1555_s7 }
  0x43   : > { %p1558_p7 = pnand %p1556_p5, %p1516_p13  ;;  %p1565_p1 = por %p1564_p0, %p1563_p12 }
  0x45   : > { %p1559_p9 = pneg %p1558_p7 }
  0x47   : > { %p1566_p2 = pnand %p1565_p1, %p1559_p9 }
  0x49   : > { %1569 = shalt.err (!%p1566_p2)
}
  0x4a   : > { %1367 = dma.hbm_to_vmem [thread:$0]  (!%p1807_p11), %s2268_s4, 1024, %s1811_s10, [#allocation9], %s2254_s19, %s2254_s19, %s2256_s20  }
  0x4b   : > { %s1872_s8 = sadd.s32 1, %s1708_s24   ;;  %s33_s26 = sadd.s32 1, %s1704_s23 }
  0x4c   : > { %s30_s30 = ssub.s32 %s1708_s24, %s1872_s8  ;;  %p40_p13 = scmp.ne.s32.totalorder %s1704_s23, %s1700_s22 }
  0x4d   : > { %p31_p6 = scmp.eq.s32.totalorder %s30_s30, 0  ;;  %p41_p10 = scmp.eq.s32.totalorder %s1708_s24, 0 }
  0x4e   : > { %p2269_p3 = scmp.eq.s32.totalorder %s1777_s25, 1  ;;  %p1381_p7 = scmp.lt.s32.totalorder %s1708_s24, 2 }
  0x4f   : > { %s1888_s11 = scalar_select %p31_p6, %s1704_s23, %s33_s26  }
  0x50   : > { %p1882_p5 = por %p2269_p3, %p40_p13  ;;  %p42_p9 = por %p41_p10, %p40_p13 }
  0x51   : > { %2271 = sst [smem:[#allocation16_spill]] %s1888_s11  ;;  %s1891_s12 = sand.u32 1, %s1704_s23  }
  0x52   : > { %s2270_s9 = scalar_select %p1882_p5, 1, 0 }
  0x53   : > { %s1146_s10 = sshll.u32 %s1891_s12, 6  ;;  %s1190_s13 = sshll.u32 %s1708_s24, 10 }
  0x54   : > { %s2272_s0 = sld [smem:[#allocation17_spill]]  ;;  %s242_s7 = scalar_lea.vmem [#allocation2], %s1146_s10 }
  0x55   : > { %s249_s17 = sshll.u32 %s242_s7, 4  ;;  %p1902_p11 = pnand %p1381_p7, %p42_p9  ;;  %s1900_s17 = int_to_ptr.vmem [resolvable:$true] %s249_s17 }
  0x56   : > { %s1149_s30 = sshll.u32 %s1891_s12, 3  ;;  %s239_s19 = scalar_lea.sflag [#allocation3], %s1891_s12 }
  0x57   : > { %p1572_p0 = pneg %p1902_p11 }
  0x5a   : > { %s1898_s16 = scalar_lea.hbm %s2272_s0, %s1190_s13  ;;  %s1575_s15 = scalar_lea.hbm %s2272_s0, 2048 }
  0x5b   : > { %s1570_s14 = scalar_lea.hbm %s1898_s16, 1024  ;;  %p1576_p13 = scmp.lt.u32.totalorder %s1898_s16, %s2272_s0 }
  0x5c   : > { %p1571_p12 = scmp.ne.s32.totalorder %s1898_s16, %s1570_s14  ;;  %p1577_p6 = scmp.lt.u32.totalorder %s1575_s15, %s1570_s14 }
  0x5d   : > { %p1579_p3 = scmp.lt.u32.totalorder %s1570_s14, %s1898_s16 }
  0x5e   : > { %p1573_p1 = pnand %p1572_p0, %p1571_p12  ;;  %p1578_p10 = por %p1577_p6, %p1576_p13 }
  0x60   : > { %p1574_p2 = pneg %p1573_p1  ;;  %p1580_p7 = por %p1579_p3, %p1578_p10 }
  0x62   : > { %p1581_p9 = pnand %p1580_p7, %p1574_p2 }
  0x64   : > { %1584 = shalt.err (!%p1581_p9)
}
  0x65   : > { %s1585_s26 = scalar_lea.vmem %s1900_s17, 1024  ;;  %s1714_s10 = smov [#allocation2]  }
  0x66   : > { %p1586_p12 = scmp.ne.s32.totalorder %s1900_s17, %s1585_s26  ;;  %s1590_s13 = sshll.u32 %s1714_s10, 4  ;;  %s1591_s13 = int_to_ptr.vmem [resolvable:$false] %s1590_s13 }
  0x67   : > { %s1592_s20 = scalar_lea.vmem %s1591_s13, 2048  ;;  %p1593_p4 = scmp.lt.s32.totalorder %s1900_s17, %s1591_s13 }
  0x68   : > { %p1588_p1 = pnand %p1586_p12, %p1572_p0  ;;  %p1594_p13 = scmp.lt.s32.totalorder %s1592_s20, %s1585_s26 }
  0x6a   : > { %p1589_p5 = pneg %p1588_p1  ;;  %p1595_p6 = por %p1594_p13, %p1593_p4 }
  0x6c   : > { %p1596_p10 = pnand %p1595_p6, %p1589_p5 }
  0x6e   : > { %1599 = shalt.err (!%p1596_p10)
}
  0x6f   : > { %s2274_s14 = smov 4   ;;  %s2275_s15 = smov 64  }
  0x70   : > { %1371 = dma.hbm_to_vmem [thread:$0]  (!%p1902_p11), %s1898_s16, 1024, %s1900_s17, %s239_s19, %s2275_s15, %s2275_s15, %s2274_s14  }
  0x71   : > { %s1191_s7 = sshll.u32 %s1708_s24, 7  ;;  %s263_s20 = scalar_lea.vmem [#allocation5], %s1149_s30 }
  0x72   : > { %s1943_s13 = scalar_lea.hbm %s2247_s1, %s1191_s7  ;;  %s270_s0 = sshll.u32 %s263_s20, 4  ;;  %s1947_s0 = int_to_ptr.vmem [resolvable:$true] %s270_s0 }
  0x73   : > { %s2276_s2 = sand.u32 1, %s1708_s24   ;;  %s1600_s11 = scalar_lea.hbm %s1943_s13, 128 }
  0x74   : > { %s1951_s4 = scalar_lea.sflag [#allocation6], %s2276_s2  ;;  %p1601_p4 = scmp.ne.s32.totalorder %s1943_s13, %s1600_s11 }
  0x75   : > { %s1605_s12 = scalar_lea.hbm %s2247_s1, 256  ;;  %p1606_p3 = scmp.lt.u32.totalorder %s1943_s13, %s2247_s1 }
  0x76   : > { %p1603_p5 = pnand %p1601_p4, %p1572_p0  ;;  %p1607_p7 = scmp.lt.u32.totalorder %s1605_s12, %s1600_s11 }
  0x77   : > { %p1609_p12 = scmp.lt.u32.totalorder %s1600_s11, %s1943_s13 }
  0x78   : > { %p1604_p2 = pneg %p1603_p5  ;;  %p1608_p9 = por %p1607_p7, %p1606_p3 }
  0x7a   : > { %p1610_p1 = por %p1609_p12, %p1608_p9 }
  0x7c   : > { %p1611_p13 = pnand %p1610_p1, %p1604_p2 }
  0x7e   : > { %1614 = shalt.err (!%p1611_p13)
}
  0x7f   : > { %s1615_s2 = scalar_lea.vmem %s1947_s0, 128  ;;  %s1715_s30 = smov [#allocation5]  }
  0x80   : > { %p1616_p6 = scmp.ne.s32.totalorder %s1947_s0, %s1615_s2  ;;  %s1620_s10 = sshll.u32 %s1715_s30, 4  ;;  %s1621_s10 = int_to_ptr.vmem [resolvable:$false] %s1620_s10 }
  0x81   : > { %s1622_s26 = scalar_lea.vmem %s1621_s10, 256  ;;  %p1623_p5 = scmp.lt.s32.totalorder %s1947_s0, %s1621_s10 }
  0x82   : > { %p1618_p10 = pnand %p1616_p6, %p1572_p0  ;;  %p1624_p3 = scmp.lt.s32.totalorder %s1622_s26, %s1615_s2 }
  0x84   : > { %p1619_p4 = pneg %p1618_p10  ;;  %p1625_p7 = por %p1624_p3, %p1623_p5 }
  0x86   : > { %p1626_p9 = pnand %p1625_p7, %p1619_p4 }
  0x88   : > { %1629 = shalt.err (!%p1626_p9)
}
  0x89   : > { %1374 = dma.hbm_to_vmem [thread:$0]  (!%p1902_p11), %s1943_s13, 128, %s1947_s0, %s1951_s4, %s2275_s15, %s2275_s15, %s2274_s14  }
  0x8a   : > { %282 = sbr.rel (%p1796_p8) target bundleno = 1295 (0x50f), region = 44  ;;  %s1983_s11 = sand.u32 (!%p1796_p8), 1, %s1700_s22  }
  0x8b   : > { %s1153_s20 = sshll.u32 (!%p1796_p8), %s1983_s11, 6  ;;  %s285_s19 = scalar_lea.sflag (!%p1796_p8), [#allocation3], %s1983_s11 }
  0x8c   : > { %s1987_s16 = scalar_lea.vmem (!%p1796_p8), [#allocation2], %s1153_s20  ;;  %p2277_p0 = scmp.ne.s32.totalorder (!%p1796_p8), %s2263_s27, 0 }
  0x91   : > { %1675 = dma.done.wait (%p2277_p0), %s285_s19, 1024  }
  0x92   : > { %1677 = vsyncadd (%p2277_p0), %s285_s19, 4294966272  ;;  %s293_s0 = sand.u32 1, %s1777_s25   ;;  %s1154_s4 = sshll.u32 %s1983_s11, 3 }
  0x93   : > { %s294_s29 = scalar_lea.sflag [#allocation6], %s293_s0  ;;  %s1995_s18 = scalar_lea.vmem [#allocation5], %s1154_s4 }
  0x94   : > { %1679 = dma.done.wait (%p2277_p0), %s294_s29, 128  }
  0x95   : > { %1681 = vsyncadd (%p2277_p0), %s294_s29, 4294967168  ;;  %p2278_p8 = scmp.eq.s32.totalorder %s1777_s25, 0 }
  0x97   : > { %1683 = dma.done.wait (%p2278_p8), [#allocation6], 1024   ;;  %p2279_p11 = pmov %p2278_p8 }
  0x98   : > { %p2280_p2 = pmov %p2278_p8 }
  0x99   : > { %1685 = vsyncadd (%p2279_p11), [#allocation6], 4294966272 }
  0x9a   : > { %1687 = dma.done.wait (%p2280_p2), [#allocation9], 1024   ;;  %p2281_p12 = pmov %p2280_p2 }
  0x9b   : > { %v1425_v0 = vld [vmem:[#allocation7] sm:$0xff]   ;;  %v1426_v1 = vld [vmem:[#allocation7 + $0x8] sm:$0xff]   ;;  %v1427_v2 = vld [vmem:[#allocation7 + $0x10] sm:$0xff]   ;;  %v1716_v58 = vmov 0.0   ;;  %v696_v61 = vlaneseq  ;;  %vm1717_vm1 = vmmov 0   ;;  %s1157_s12 = sshll.u32 %s1983_s11, 4 }
  0x9c   : > { %1689 = vsyncadd (%p2281_p12), [#allocation9], 4294966272  ;;  %1243 = vmatprep.subr.bf16.mxu0 %v1425_v0  ;;  %v1428_v3 = vld [vmem:[#allocation7 + $0x18] sm:$0xff]   ;;  %v1433_v4 = vld [vmem:[%s1987_s16] sm:$0xff]   ;;  %s338_s17 = scalar_lea.vmem [#allocation10], %s1157_s12  ;;  %s1192_s2 = sshll.u32 %s1777_s25, 8 }
  0x9d   : > { %1244 = vmatpush3.bf16.msra.mxu0 %v1425_v0  ;;  %1259 = vmatprep.mubr.bf16.mxu0 %v1433_v4  ;;  %v1429_v5 = vld [vmem:[#allocation7 + $0x20] sm:$0xff]   ;;  %v1430_v6 = vld [vmem:[#allocation7 + $0x28] sm:$0xff]   ;;  %v1431_v7 = vld [vmem:[#allocation7 + $0x30] sm:$0xff]   ;;  %v697_v62 = vand.u32 127, %v696_v61  ;;  %s1026_s7 = sshll.u32 %s338_s17, 4  ;;  %s2202_s26 = scalar_lea.hbm %s2252_s6, %s1192_s2  ;;  %s2197_s7 = int_to_ptr.vmem [resolvable:$true] %s1026_s7 }
  0x9e   : > { %1245 = vmatprep.subr.bf16.mxu0 %v1426_v1  ;;  %v1432_v8 = vld [vmem:[#allocation7 + $0x38] sm:$0xff]   ;;  %v1435_v10 = vld [vmem:[%s1987_s16 + $0x10] sm:$0xff]   ;;  %v1436_v11 = vld [vmem:[%s1987_s16 + $0x18] sm:$0xff]   ;;  %s1013_s20 = scalar_lea.sflag [#allocation4], %s1983_s11  ;;  %s1630_s19 = scalar_lea.vmem %s2197_s7, 256 }
  0x9f   : > { %v1434_v9 = vld [vmem:[%s1987_s16 + $0x8] sm:$0xff]   ;;  %v1437_v12 = vld [vmem:[%s1987_s16 + $0x20] sm:$0xff]   ;;  %v1439_v14 = vld [vmem:[%s1987_s16 + $0x30] sm:$0xff]   ;;  %vm698_vm0 = vcmp.lt.s32.totalorder %v697_v62, 116  ;;  %p1631_p1 = scmp.ne.s32.totalorder %s2197_s7, %s1630_s19  ;;  %p2282_p13 = scmp.ne.s32.totalorder %s2270_s9, 0 }
  0xa0   : > { %v1438_v13 = vld [vmem:[%s1987_s16 + $0x28] sm:$0xff]   ;;  %v1440_v15 = vld [vmem:[%s1987_s16 + $0x38] sm:$0xff]   ;;  %v1158_v17 = vld [vmem:[%s2249_s3] ss:$0 sm:$0xff]  ;;  %s1718_s25 = smov [#allocation10]  }
  0xa1   : > { %1246 = vmatpush3.bf16.msra.mxu0 %v1426_v1  ;;  %v1441_v57 = vld [vmem:[#allocation8] sm:$0xff]   ;;  %v1442_v59 = vld [vmem:[#allocation8 + $0x8] sm:$0xff]   ;;  %v1443_v60 = vld [vmem:[#allocation8 + $0x10] sm:$0xff]   ;;  %p1632_p6 = pnand %p1631_p1, %p2282_p13  ;;  %s1634_s16 = sshll.u32 %s1718_s25, 4  ;;  %s1635_s16 = int_to_ptr.vmem [resolvable:$false] %s1634_s16 }
  0xa2   : > { %1247 = vmatprep.subr.bf16.mxu0 %v1427_v2  ;;  %s1636_s0 = scalar_lea.vmem %s1635_s16, 512  ;;  %p1637_p4 = scmp.lt.s32.totalorder %s2197_s7, %s1635_s16 }
  0xa3   : > { %p1633_p10 = pneg %p1632_p6  ;;  %p1638_p5 = scmp.lt.s32.totalorder %s1636_s0, %s1630_s19 }
  0xa5   : > { %1248 = vmatpush3.bf16.msra.mxu0 %v1427_v2  ;;  %p1639_p3 = por %p1638_p5, %p1637_p4 }
  0xa6   : > { %1249 = vmatprep.subr.bf16.mxu0 %v1428_v3 }
  0xa7   : > { %p1640_p7 = pnand %p1639_p3, %p1633_p10 }
  0xa9   : > { %1250 = vmatpush3.bf16.msra.mxu0 %v1428_v3 }
  0xaa   : > { %1251 = vmatprep.subr.bf16.mxu0 %v1429_v5 }
  0xad   : > { %1252 = vmatpush3.bf16.msra.mxu0 %v1429_v5 }
  0xae   : > { %1253 = vmatprep.subr.bf16.mxu0 %v1430_v6 }
  0xb1   : > { %1254 = vmatpush3.bf16.msra.mxu0 %v1430_v6 }
  0xb2   : > { %1255 = vmatprep.subr.bf16.mxu0 %v1431_v7 }
  0xb5   : > { %1256 = vmatpush3.bf16.msra.mxu0 %v1431_v7 }
  0xb6   : > { %1257 = vmatprep.subr.bf16.mxu0 %v1432_v8 }
  0xb9   : > { %1258 = vmatpush3.bf16.msra.mxu0 %v1432_v8 }
  0xba   : > { %1327 = vmatprep.subr.bf16.mxu0 %v1716_v58 }
  0xbc   : > { %1260 = vmatmul.mubr.bf16.vlgmr.msra.gmra.mrb[0].mxu0 %v1434_v9 }
  0xbd   : > { %1263 = vmatprep.mubr.bf16.mxu0 %v1435_v10 }
  0xc4   : > { %1264 = vmatmul.mubr.bf16.gmra.mrb[4].mxu0 %v1436_v11 }
  0xc5   : > { %1267 = vmatprep.mubr.bf16.mxu0 %v1437_v12 }
  0xcc   : > { %1268 = vmatmul.mubr.bf16.gmra.mrb[8].mxu0 %v1438_v13 }
  0xcd   : > { %1271 = vmatprep.mubr.bf16.mxu0 %v1439_v14  ;;  %v1444_v14 = vld [vmem:[#allocation8 + $0x18] sm:$0xff]  }
  0xd4   : > { %1272 = vmatmul.mubr.bf16.gmra.mrb[12].mxu0 %v1440_v15 }
  0xd5   : > { %1343 = vmatprep.mubr.msk.bf16.mxu0 %vm1717_vm1, %v1716_v58 }
 0x18f   : > { %v1261_v16 = vpop.f32.mrb[0].mxu0 }
 0x190   : > { %v528_v18 = vpop.f32.mrb[1].mxu0  ;;  %v537_v20 = vadd.f32 %v1261_v16, %v1158_v17 }
 0x191   : > { %v1262_v19 = vpop.f32.mrb[2].mxu0  ;;  %v529_v23 = vadd.f32 %v1158_v17, %v528_v18 }
 0x192   : > { %v540_v21 = vadd.f32 %v1262_v19, %v1158_v17  ;;  %v531_v22 = vpop.f32.mrb[3].mxu0 }
 0x193   : > { %v532_v24 = vadd.f32 %v1158_v17, %v531_v22 }
 0x194   : > { %v592_v25 = vpack.c.bf16 %v540_v21, %v537_v20  ;;  %v1445_v20 = vld [vmem:[#allocation8 + $0x20] sm:$0xff]  }
 0x195   : > { %v591_v26 = vpack.c.bf16 %v532_v24, %v529_v23  ;;  %v1446_v24 = vld [vmem:[#allocation8 + $0x28] sm:$0xff]  }
 0x197   : > { %1275 = vmatprep.subr.bf16.mxu1 %v591_v26  ;;  %1291 = vmatprep.mubr.bf16.mxu1 %v591_v26  ;;  %v1265_v27 = vpop.f32.mrb[4].mxu0 }
 0x198   : > { %1276 = vmatpush3.bf16.xpose.msra.mxu1 %v591_v26  ;;  %v553_v28 = vadd.f32 %v1265_v27, %v1158_v17  ;;  %v544_v29 = vpop.f32.mrb[5].mxu0 }
 0x199   : > { %1277 = vmatprep.subr.bf16.mxu1 %v592_v25  ;;  %v545_v30 = vadd.f32 %v1158_v17, %v544_v29  ;;  %v1266_v31 = vpop.f32.mrb[6].mxu0 }
 0x19a   : > { %v556_v32 = vadd.f32 %v1266_v31, %v1158_v17  ;;  %v547_v33 = vpop.f32.mrb[7].mxu0 }
 0x19b   : > { %v548_v34 = vadd.f32 %v1158_v17, %v547_v33 }
 0x19c   : > { %v594_v35 = vpack.c.bf16 %v556_v32, %v553_v28 }
 0x19d   : > { %v593_v36 = vpack.c.bf16 %v548_v34, %v545_v30  ;;  %v1447_v30 = vld [vmem:[#allocation8 + $0x30] sm:$0xff]   ;;  %v1448_v34 = vld [vmem:[#allocation8 + $0x38] sm:$0xff]  }
 0x19f   : > { %v1269_v37 = vpop.f32.mrb[8].mxu0 }
 0x1a0   : > { %1278 = vmatpush3.bf16.xpose.msra.mxu1 %v592_v25  ;;  %v569_v38 = vadd.f32 %v1269_v37, %v1158_v17  ;;  %v560_v39 = vpop.f32.mrb[9].mxu0 }
 0x1a1   : > { %1279 = vmatprep.subr.bf16.mxu1 %v593_v36  ;;  %v561_v40 = vadd.f32 %v1158_v17, %v560_v39  ;;  %v1270_v41 = vpop.f32.mrb[10].mxu0 }
 0x1a2   : > { %v572_v42 = vadd.f32 %v1270_v41, %v1158_v17  ;;  %v563_v43 = vpop.f32.mrb[11].mxu0 }
 0x1a3   : > { %v564_v44 = vadd.f32 %v1158_v17, %v563_v43 }
 0x1a4   : > { %v596_v45 = vpack.c.bf16 %v572_v42, %v569_v38 }
 0x1a5   : > { %v595_v46 = vpack.c.bf16 %v564_v44, %v561_v40 }
 0x1a7   : > { %v1273_v47 = vpop.f32.mrb[12].mxu0 }
 0x1a8   : > { %1280 = vmatpush3.bf16.xpose.msra.mxu1 %v593_v36  ;;  %v585_v48 = vadd.f32 %v1273_v47, %v1158_v17  ;;  %v576_v49 = vpop.f32.mrb[13].mxu0 }
 0x1a9   : > { %1281 = vmatprep.subr.bf16.mxu1 %v594_v35  ;;  %v577_v50 = vadd.f32 %v1158_v17, %v576_v49  ;;  %v1274_v51 = vpop.f32.mrb[14].mxu0 }
 0x1aa   : > { %v588_v52 = vadd.f32 %v1274_v51, %v1158_v17  ;;  %v579_v53 = vpop.f32.mrb[15].mxu0 }
 0x1ab   : > { %v580_v54 = vadd.f32 %v1158_v17, %v579_v53 }
 0x1ac   : > { %v598_v55 = vpack.c.bf16 %v588_v52, %v585_v48 }
 0x1ad   : > { %v597_v56 = vpack.c.bf16 %v580_v54, %v577_v50 }
 0x1b0   : > { %1282 = vmatpush3.bf16.xpose.msra.mxu1 %v594_v35 }
 0x1b1   : > { %1283 = vmatprep.subr.bf16.mxu1 %v595_v46 }
 0x1b8   : > { %1284 = vmatpush3.bf16.xpose.msra.mxu1 %v595_v46 }
 0x1b9   : > { %1285 = vmatprep.subr.bf16.mxu1 %v596_v45 }
 0x1c0   : > { %1286 = vmatpush3.bf16.xpose.msra.mxu1 %v596_v45 }
 0x1c1   : > { %1287 = vmatprep.subr.bf16.mxu1 %v597_v56 }
 0x1c8   : > { %1288 = vmatpush3.bf16.xpose.msra.mxu1 %v597_v56 }
 0x1c9   : > { %1289 = vmatprep.subr.bf16.mxu1 %v598_v55 }
 0x1d0   : > { %1290 = vmatpush3.bf16.xpose.msra.mxu1 %v598_v55 }
 0x1d1   : > { %1307 = vmatprep.subr.bf16.mxu1 %v1716_v58 }
 0x1d7   : > { %1292 = vmatmul.mubr.bf16.vlgmr.msra.gmra.mrb[0].mxu1 %v592_v25 }
 0x1d8   : > { %1295 = vmatprep.mubr.bf16.mxu1 %v593_v36  ;;  %1308 = vmatpush3.bf16.msra.mxu1 %v1441_v57  ;;  %v1449_v36 = vld [vmem:[%s1995_s18] sm:$0xff]  }
 0x1d9   : > { %1309 = vmatprep.subr.bf16.mxu1 %v1716_v58 }
 0x1dc   : > { %1310 = vmatpush3.bf16.msra.mxu1 %v1442_v59 }
 0x1dd   : > { %1311 = vmatprep.subr.bf16.mxu1 %v1716_v58 }
 0x1df   : > { %1296 = vmatmul.mubr.bf16.gmra.mrb[4].mxu1 %v594_v35 }
 0x1e0   : > { %1299 = vmatprep.mubr.bf16.mxu1 %v595_v46  ;;  %1312 = vmatpush3.bf16.msra.mxu1 %v1443_v60 }
 0x1e1   : > { %1313 = vmatprep.subr.bf16.mxu1 %v1716_v58 }
 0x1e4   : > { %1314 = vmatpush3.bf16.msra.mxu1 %v1444_v14 }
 0x1e5   : > { %1315 = vmatprep.subr.bf16.mxu1 %v1716_v58 }
 0x1e7   : > { %1300 = vmatmul.mubr.bf16.gmra.mrb[8].mxu1 %v596_v45 }
 0x1e8   : > { %1303 = vmatprep.mubr.bf16.mxu1 %v597_v56  ;;  %1316 = vmatpush3.bf16.msra.mxu1 %v1445_v20 }
 0x1e9   : > { %1317 = vmatprep.subr.bf16.mxu1 %v1716_v58 }
 0x1ec   : > { %1318 = vmatpush3.bf16.msra.mxu1 %v1446_v24 }
 0x1ed   : > { %1319 = vmatprep.subr.bf16.mxu1 %v1716_v58 }
 0x1ef   : > { %1304 = vmatmul.mubr.bf16.gmra.mrb[12].mxu1 %v598_v55 }
 0x1f0   : > { %1320 = vmatpush3.bf16.msra.mxu1 %v1447_v30  ;;  %1323 = vmatprep.mubr.msk.bf16.mxu1 %vm1717_vm1, %v1716_v58 }
 0x1f1   : > { %1321 = vmatprep.subr.bf16.mxu1 %v1716_v58 }
 0x1f4   : > { %1322 = vmatpush3.bf16.msra.mxu1 %v1448_v34 }
 0x1f7   : > { %1324 = vmatmul.mubr.bf16.vlgmr.msra.gmra.mrb[16].mxu1 %v1449_v36 }
 0x2aa   : > { %v1293_v63 = vpop.f32.mrb[0].mxu1 }
 0x2ab   : > { %v633_v0 = vpop.f32.mrb[1].mxu1  ;;  %v2026_v1 = vsel %vm698_vm0, %v1293_v63, -1e+30 }
 0x2ac   : > { %719 = vmax.xlane.f32.xlu1 %v2026_v1  ;;  %v1294_v2 = vpop.f32.mrb[2].mxu1  ;;  %v2030_v3 = vsel %vm698_vm0, %v633_v0, -1e+30 }
 0x2ad   : > { %715 = vmax.xlane.f32.xlu0 %v2030_v3  ;;  %v636_v4 = vpop.f32.mrb[3].mxu1  ;;  %v2034_v5 = vsel %vm698_vm0, %v1294_v2, -1e+30 }
 0x2ae   : > { %v2038_v6 = vsel %vm698_vm0, %v636_v4, -1e+30 }
 0x2b0   : > { %721 = vmax.xlane.f32.xlu1 %v2034_v5 }
 0x2b1   : > { %717 = vmax.xlane.f32.xlu0 %v2038_v6 }
 0x2b2   : > { %v1297_v7 = vpop.f32.mrb[4].mxu1 }
 0x2b3   : > { %v649_v8 = vpop.f32.mrb[5].mxu1  ;;  %v2050_v13 = vsel %vm698_vm0, %v1297_v7, -1e+30 }
 0x2b4   : > { %v1298_v9 = vpop.f32.mrb[6].mxu1  ;;  %v2042_v10 = vsel %vm698_vm0, %v649_v8, -1e+30 }
 0x2b5   : > { %723 = vmax.xlane.f32.xlu0 %v2042_v10  ;;  %v652_v11 = vpop.f32.mrb[7].mxu1  ;;  %v2054_v16 = vsel %vm698_vm0, %v1298_v9, -1e+30 }
 0x2b6   : > { %v2046_v12 = vsel %vm698_vm0, %v652_v11, -1e+30 }
 0x2b7   : > { %725 = vmax.xlane.f32.xlu1 %v2046_v12 }
 0x2b9   : > { %727 = vmax.xlane.f32.xlu0 %v2050_v13 }
 0x2ba   : > { %v1301_v15 = vpop.f32.mrb[8].mxu1 }
 0x2bb   : > { %729 = vmax.xlane.f32.xlu1 %v2054_v16  ;;  %v665_v17 = vpop.f32.mrb[9].mxu1  ;;  %v2068_v23 = vsel %vm698_vm0, %v1301_v15, -1e+30 }
 0x2bc   : > { %v1302_v18 = vpop.f32.mrb[10].mxu1  ;;  %v2059_v19 = vsel %vm698_vm0, %v665_v17, -1e+30 }
 0x2bd   : > { %731 = vmax.xlane.f32.xlu0 %v2059_v19  ;;  %v668_v21 = vpop.f32.mrb[11].mxu1  ;;  %v2072_v26 = vsel %vm698_vm0, %v1302_v18, -1e+30 }
 0x2be   : > { %v2063_v22 = vsel %vm698_vm0, %v668_v21, -1e+30 }
 0x2bf   : > { %733 = vmax.xlane.f32.xlu1 %v2063_v22 }
 0x2c1   : > { %735 = vmax.xlane.f32.xlu0 %v2068_v23 }
 0x2c2   : > { %v1305_v25 = vpop.f32.mrb[12].mxu1 }
 0x2c3   : > { %737 = vmax.xlane.f32.xlu1 %v2072_v26  ;;  %v681_v27 = vpop.f32.mrb[13].mxu1  ;;  %v2086_v33 = vsel %vm698_vm0, %v1305_v25, -1e+30 }
 0x2c4   : > { %v1306_v28 = vpop.f32.mrb[14].mxu1  ;;  %v2077_v29 = vsel %vm698_vm0, %v681_v27, -1e+30 }
 0x2c5   : > { %739 = vmax.xlane.f32.xlu0 %v2077_v29  ;;  %v684_v31 = vpop.f32.mrb[15].mxu1  ;;  %v2090_v35 = vsel %vm698_vm0, %v1306_v28, -1e+30 }
 0x2c6   : > { %v2081_v32 = vsel %vm698_vm0, %v684_v31, -1e+30 }
 0x2c7   : > { %741 = vmax.xlane.f32.xlu1 %v2081_v32 }
 0x2c9   : > { %743 = vmax.xlane.f32.xlu0 %v2086_v33 }
 0x2cb   : > { %745 = vmax.xlane.f32.xlu1 %v2090_v35 }
 0x339   : > { %v720_v37 = vpop.xlane.xlu1 %719 }
 0x33a   : > { %v749_v38 = vsub.f32 %v2026_v1, %v720_v37  ;;  %v716_v39 = vpop.xlane.xlu0 %715 }
 0x33b   : > { %v747_v40 = vsub.f32 %v2030_v3, %v716_v39  ;;  %v953_v39 = vpop.f32.mrb[16].mxu1 }
 0x33c   : > { %v767_v43 = vmul.f32 1.442695, %v749_v38  ;;  %v1175_v38 = vld [vmem:[%s2251_s5] ss:$0 sm:$0xff] }
 0x33d   : > { %v763_v41 = vmul.f32 1.442695, %v747_v40  ;;  %v722_v42 = vpop.xlane.xlu1 %721  ;;  %v2163_v40 = vadd.f32 %v1175_v38, %v953_v39 }
 0x33e   : > { %v750_v44 = vsub.f32 %v2034_v5, %v722_v42  ;;  %v718_v45 = vpop.xlane.xlu0 %717 }
 0x33f   : > { %1450 = vpow2.f32 %v763_v41  ;;  %v748_v46 = vsub.f32 %v2038_v6, %v718_v45  ;;  %v1325_v41 = vpop.f32.mrb[17].mxu1 }
 0x340   : > { %1452 = vpow2.f32 %v767_v43  ;;  %v769_v48 = vmul.f32 1.442695, %v750_v44  ;;  %v956_v42 = vpop.f32.mrb[18].mxu1 }
 0x341   : > { %v765_v47 = vmul.f32 1.442695, %v748_v46  ;;  %v2165_v43 = vadd.f32 %v1175_v38, %v956_v42  ;;  %v1326_v44 = vpop.f32.mrb[19].mxu1 }
 0x342   : > { %v724_v49 = vpop.xlane.xlu0 %723 }
 0x343   : > { %1454 = vpow2.f32 %v765_v47  ;;  %v751_v50 = vsub.f32 %v2042_v10, %v724_v49  ;;  %v960_v45 = vpack.c.bf16 %v2165_v43, %v2163_v40 }
 0x344   : > { %v726_v51 = vpop.xlane.xlu1 %725  ;;  %1456 = vpow2.f32 %v769_v48 }
 0x345   : > { %v771_v52 = vmul.f32 1.442695, %v751_v50  ;;  %v752_v53 = vsub.f32 %v2046_v12, %v726_v51 }
 0x346   : > { %v728_v54 = vpop.xlane.xlu0 %727 }
 0x347   : > { %1458 = vpow2.f32 %v771_v52  ;;  %v773_v55 = vmul.f32 1.442695, %v752_v53  ;;  %v753_v56 = vsub.f32 %v2050_v13, %v728_v54 }
 0x348   : > { %v730_v57 = vpop.xlane.xlu1 %729 }
 0x349   : > { %v2103_v59 = vpop.eup %1450  ;;  %v775_v60 = vmul.f32 1.442695, %v753_v56  ;;  %v754_v61 = vsub.f32 %v2054_v16, %v730_v57  ;;  %1460 = vpow2.f32 %v773_v55 }
 0x34a   : > { %v732_v62 = vpop.xlane.xlu0 %731  ;;  %795 = vadd.xlane.f32.xlu0 %v2103_v59  ;;  %v2108_v1 = vpop.eup %1452 }
 0x34b   : > { %1462 = vpow2.f32 %v775_v60  ;;  %v777_v63 = vmul.f32 1.442695, %v754_v61  ;;  %v755_v0 = vsub.f32 %v2059_v19, %v732_v62 }
 0x34c   : > { %v734_v2 = vpop.xlane.xlu1 %733 }
 0x34d   : > { %v2110_v3 = vpop.eup %1454  ;;  %v779_v4 = vmul.f32 1.442695, %v755_v0  ;;  %v756_v5 = vsub.f32 %v2063_v22, %v734_v2  ;;  %1464 = vpow2.f32 %v777_v63 }
 0x34e   : > { %v736_v6 = vpop.xlane.xlu0 %735  ;;  %799 = vadd.xlane.f32.xlu0 %v2108_v1  ;;  %797 = vadd.xlane.f32.xlu1 %v2110_v3  ;;  %v2116_v9 = vpop.eup %1456 }
 0x34f   : > { %1466 = vpow2.f32 %v779_v4  ;;  %v781_v7 = vmul.f32 1.442695, %v756_v5  ;;  %v757_v8 = vsub.f32 %v2068_v23, %v736_v6 }
 0x350   : > { %v738_v10 = vpop.xlane.xlu1 %737 }
 0x351   : > { %v2118_v11 = vpop.eup %1458  ;;  %v783_v12 = vmul.f32 1.442695, %v757_v8  ;;  %v758_v13 = vsub.f32 %v2072_v26, %v738_v10  ;;  %1468 = vpow2.f32 %v781_v7 }
 0x352   : > { %803 = vadd.xlane.f32.xlu0 %v2118_v11  ;;  %v740_v14 = vpop.xlane.xlu0 %739  ;;  %801 = vadd.xlane.f32.xlu1 %v2116_v9 }
 0x353   : > { %1470 = vpow2.f32 %v783_v12  ;;  %v785_v15 = vmul.f32 1.442695, %v758_v13  ;;  %v759_v16 = vsub.f32 %v2077_v29, %v740_v14  ;;  %v2124_v17 = vpop.eup %1460 }
 0x354   : > { %v742_v18 = vpop.xlane.xlu1 %741 }
 0x355   : > { %v2126_v19 = vpop.eup %1462  ;;  %v787_v20 = vmul.f32 1.442695, %v759_v16  ;;  %v760_v21 = vsub.f32 %v2081_v32, %v742_v18  ;;  %1472 = vpow2.f32 %v785_v15 }
 0x356   : > { %807 = vadd.xlane.f32.xlu0 %v2126_v19  ;;  %v744_v22 = vpop.xlane.xlu0 %743  ;;  %805 = vadd.xlane.f32.xlu1 %v2124_v17 }
 0x357   : > { %1474 = vpow2.f32 %v787_v20  ;;  %v789_v23 = vmul.f32 1.442695, %v760_v21  ;;  %v761_v24 = vsub.f32 %v2086_v33, %v744_v22  ;;  %v2132_v25 = vpop.eup %1464 }
 0x358   : > { %v746_v26 = vpop.xlane.xlu1 %745 }
 0x359   : > { %v2134_v27 = vpop.eup %1466  ;;  %v791_v28 = vmul.f32 1.442695, %v761_v24  ;;  %v762_v29 = vsub.f32 %v2090_v35, %v746_v26  ;;  %1476 = vpow2.f32 %v789_v23 }
 0x35a   : > { %811 = vadd.xlane.f32.xlu0 %v2134_v27  ;;  %809 = vadd.xlane.f32.xlu1 %v2132_v25 }
 0x35b   : > { %1478 = vpow2.f32 %v791_v28  ;;  %v793_v30 = vmul.f32 1.442695, %v762_v29  ;;  %v2139_v31 = vpop.eup %1468 }
 0x35d   : > { %v2141_v32 = vpop.eup %1470  ;;  %1480 = vpow2.f32 %v793_v30 }
 0x35e   : > { %815 = vadd.xlane.f32.xlu0 %v2141_v32  ;;  %813 = vadd.xlane.f32.xlu1 %v2139_v31 }
 0x35f   : > { %v2145_v33 = vpop.eup %1472 }
 0x361   : > { %v2147_v34 = vpop.eup %1474 }
 0x362   : > { %819 = vadd.xlane.f32.xlu0 %v2147_v34  ;;  %817 = vadd.xlane.f32.xlu1 %v2145_v33 }
 0x363   : > { %v2151_v35 = vpop.eup %1476 }
 0x365   : > { %v2153_v36 = vpop.eup %1478 }
 0x366   : > { %823 = vadd.xlane.f32.xlu0 %v2153_v36  ;;  %821 = vadd.xlane.f32.xlu1 %v2151_v35 }
 0x367   : > { %v2157_v37 = vpop.eup %1480 }
 0x36a   : > { %825 = vadd.xlane.f32.xlu1 %v2157_v37 }
 0x3d7   : > { %v796_v46 = vpop.xlane.xlu0 %795 }
 0x3d8   : > { %1482 = vrcp.f32 %v796_v46 }
 0x3db   : > { %v798_v47 = vpop.xlane.xlu1 %797  ;;  %v800_v49 = vpop.xlane.xlu0 %799 }
 0x3dc   : > { %1484 = vrcp.f32 %v798_v47 }
 0x3df   : > { %v802_v48 = vpop.xlane.xlu1 %801  ;;  %v804_v53 = vpop.xlane.xlu0 %803 }
 0x3e0   : > { %1486 = vrcp.f32 %v802_v48 }
 0x3e1   : > { %1488 = vrcp.f32 %v800_v49 }
 0x3e2   : > { %v1483_v50 = vpop.eup %1482 }
 0x3e3   : > { %v806_v51 = vpop.xlane.xlu1 %805  ;;  %v843_v54 = vmul.f32 %v1483_v50, %v2103_v59  ;;  %v808_v63 = vpop.xlane.xlu0 %807 }
 0x3e4   : > { %1490 = vrcp.f32 %v806_v51 }
 0x3e5   : > { %1492 = vrcp.f32 %v804_v53 }
 0x3e6   : > { %v1485_v52 = vpop.eup %1484 }
 0x3e7   : > { %v844_v55 = vmul.f32 %v1485_v52, %v2110_v3  ;;  %v810_v61 = vpop.xlane.xlu1 %809  ;;  %v812_v6 = vpop.xlane.xlu0 %811 }
 0x3e8   : > { %1494 = vrcp.f32 %v810_v61 }
 0x3e9   : > { %v961_v56 = vpack.c.bf16 %v844_v55, %v843_v54  ;;  %1496 = vrcp.f32 %v808_v63 }
 0x3ea   : > { %v1487_v57 = vpop.eup %1486 }
 0x3eb   : > { %1328 = vmatpush3.bf16.xpose.msra.mxu0 %v961_v56  ;;  %v1489_v60 = vpop.eup %1488  ;;  %v846_v62 = vmul.f32 %v1487_v57, %v2116_v9  ;;  %v814_v3 = vpop.xlane.xlu1 %813 }
 0x3ec   : > { %1329 = vmatprep.subr.bf16.mxu0 %v1716_v58  ;;  %v845_v0 = vmul.f32 %v1489_v60, %v2108_v1  ;;  %1498 = vrcp.f32 %v814_v3  ;;  %v816_v13 = vpop.xlane.xlu0 %815 }
 0x3ed   : > { %1500 = vrcp.f32 %v812_v6 }
 0x3ee   : > { %v962_v2 = vpack.c.bf16 %v846_v62, %v845_v0  ;;  %v1491_v4 = vpop.eup %1490 }
 0x3ef   : > { %v1493_v59 = vpop.eup %1492  ;;  %v848_v5 = vmul.f32 %v1491_v4, %v2124_v17  ;;  %v818_v10 = vpop.xlane.xlu1 %817 }
 0x3f0   : > { %v847_v7 = vmul.f32 %v1493_v59, %v2118_v11  ;;  %1502 = vrcp.f32 %v818_v10  ;;  %v820_v20 = vpop.xlane.xlu0 %819 }
 0x3f1   : > { %1504 = vrcp.f32 %v816_v13 }
 0x3f2   : > { %v963_v8 = vpack.c.bf16 %v848_v5, %v847_v7  ;;  %v1495_v9 = vpop.eup %1494 }
 0x3f3   : > { %1330 = vmatpush3.bf16.xpose.msra.mxu0 %v962_v2  ;;  %v1497_v1 = vpop.eup %1496  ;;  %v850_v12 = vmul.f32 %v1495_v9, %v2132_v25  ;;  %v822_v17 = vpop.xlane.xlu1 %821 }
 0x3f4   : > { %1331 = vmatprep.subr.bf16.mxu0 %v1716_v58  ;;  %v849_v14 = vmul.f32 %v1497_v1, %v2126_v19  ;;  %1506 = vrcp.f32 %v822_v17  ;;  %v824_v26 = vpop.xlane.xlu0 %823 }
 0x3f5   : > { %1508 = vrcp.f32 %v820_v20 }
 0x3f6   : > { %v964_v15 = vpack.c.bf16 %v850_v12, %v849_v14  ;;  %v1499_v16 = vpop.eup %1498 }
 0x3f7   : > { %v1501_v11 = vpop.eup %1500  ;;  %v852_v18 = vmul.f32 %v1499_v16, %v2139_v31  ;;  %v826_v24 = vpop.xlane.xlu1 %825 }
 0x3f8   : > { %v851_v21 = vmul.f32 %v1501_v11, %v2134_v27  ;;  %1510 = vrcp.f32 %v826_v24 }
 0x3f9   : > { %1512 = vrcp.f32 %v824_v26 }
 0x3fa   : > { %v965_v22 = vpack.c.bf16 %v852_v18, %v851_v21  ;;  %v1503_v23 = vpop.eup %1502 }
 0x3fb   : > { %1332 = vmatpush3.bf16.xpose.msra.mxu0 %v963_v8  ;;  %v1505_v19 = vpop.eup %1504  ;;  %v854_v25 = vmul.f32 %v1503_v23, %v2145_v33 }
 0x3fc   : > { %1333 = vmatprep.subr.bf16.mxu0 %v1716_v58  ;;  %v853_v28 = vmul.f32 %v1505_v19, %v2141_v32 }
 0x3fe   : > { %v966_v29 = vpack.c.bf16 %v854_v25, %v853_v28  ;;  %v1507_v30 = vpop.eup %1506 }
 0x3ff   : > { %v1509_v27 = vpop.eup %1508  ;;  %v856_v31 = vmul.f32 %v1507_v30, %v2151_v35 }
 0x400   : > { %v855_v38 = vmul.f32 %v1509_v27, %v2147_v34 }
 0x402   : > { %v967_v39 = vpack.c.bf16 %v856_v31, %v855_v38  ;;  %v1511_v41 = vpop.eup %1510 }
 0x403   : > { %1334 = vmatpush3.bf16.xpose.msra.mxu0 %v964_v15  ;;  %v1513_v33 = vpop.eup %1512  ;;  %v858_v32 = vmul.f32 %v1511_v41, %v2157_v37 }
 0x404   : > { %1335 = vmatprep.subr.bf16.mxu0 %v1716_v58  ;;  %v857_v42 = vmul.f32 %v1513_v33, %v2153_v36 }
 0x406   : > { %v968_v44 = vpack.c.bf16 %v858_v32, %v857_v42 }
 0x40b   : > { %1336 = vmatpush3.bf16.xpose.msra.mxu0 %v965_v22 }
 0x40c   : > { %1337 = vmatprep.subr.bf16.mxu0 %v1716_v58 }
 0x413   : > { %1338 = vmatpush3.bf16.xpose.msra.mxu0 %v966_v29 }
 0x414   : > { %1339 = vmatprep.subr.bf16.mxu0 %v1716_v58 }
 0x41b   : > { %1340 = vmatpush3.bf16.xpose.msra.mxu0 %v967_v39 }
 0x41c   : > { %1341 = vmatprep.subr.bf16.mxu0 %v1716_v58 }
 0x423   : > { %1342 = vmatpush3.bf16.xpose.msra.mxu0 %v968_v44 }
 0x42a   : > { %1344 = vmatmul.mubr.bf16.vlgmr.msra.gmra.mrb[16].mxu0 %v960_v45 }
 0x4fd   : > { %v1003_v58 = vpop.f32.mrb[16].mxu0 }
 0x4fe   : > { %1010 = vst [vmem:[%s338_s17] sm:$0xff] %v1003_v58  ;;  %v1345_v34 = vpop.f32.mrb[17].mxu0 }
 0x4ff   : > { %v1006_v35 = vpop.f32.mrb[18].mxu0 }
 0x500   : > { %1011 = vst [vmem:[%s338_s17 + $0x8] sm:$0xff] %v1006_v35  ;;  %v1346_v36 = vpop.f32.mrb[19].mxu0 }
 0x501   : > { %1643 = shalt.err (!%p1640_p7)
}
 0x502   : > { %s1644_s4 = scalar_lea.hbm %s2202_s26, 256  ;;  %s1648_s27 = scalar_lea.hbm %s2252_s6, 512 }
 0x503   : > { %p1645_p9 = scmp.ne.s32.totalorder %s2202_s26, %s1644_s4  ;;  %p1649_p11 = scmp.lt.u32.totalorder %s2202_s26, %s2252_s6 }
 0x504   : > { %p1650_p2 = scmp.lt.u32.totalorder %s1648_s27, %s1644_s4  ;;  %p1652_p1 = scmp.lt.u32.totalorder %s1644_s4, %s2202_s26 }
 0x505   : > { %p1646_p0 = pnand %p1645_p9, %p2282_p13 }
 0x506   : > { %p1651_p12 = por %p1650_p2, %p1649_p11 }
 0x507   : > { %p1647_p8 = pneg %p1646_p0 }
 0x508   : > { %p1653_p6 = por %p1652_p1, %p1651_p12 }
 0x50a   : > { %p1654_p10 = pnand %p1653_p6, %p1647_p8 }
 0x50c   : > { %1657 = shalt.err (!%p1654_p10)
}
 0x50d   : > { %s1719_s13 = smov 128   ;;  %s1720_s12 = smov 8  }
 0x50e   : > { %1359 = dma.vmem_to_hbm [thread:$0]  (%p2282_p13), %s2197_s7, 256, %s2202_s26, %s1013_s20, %s1719_s13, %s1719_s13, %s1720_s12  }
 0x50f PF: > { %s1041_s17 = sand.u32 1, %s1696_s21   ;;  %p2283_p4 = scmp.ne.s32.totalorder %s2264_s28, 0 }
 0x510   : > { %p2284_p5 = scmp.ge.s32.totalorder %s1708_s24, 2  ;;  %s1042_s2 = scalar_lea.sflag [#allocation4], %s1041_s17 }
 0x512   : > { %p1376_p3 = pnand %p2284_p5, %p2283_p4 }
 0x514   : > { %1691 = dma.done.wait (!%p1376_p3), %s1042_s2, 256  }
 0x515   : > { %1693 = vsyncadd (!%p1376_p3), %s1042_s2, 4294967040  ;;  %s2285_s30 = sld [smem:[#allocation16_spill]]  ;;  %p23_p7 = scmp.ge.s32.totalorder %s1872_s8, 4  }
 0x516   : > { %s2286_s21 = smov %s1700_s22  ;;  %s2287_s22 = smov %s1704_s23 }
 0x517   : > { %s2289_s24 = smov %s1872_s8  ;;  %25 = sbr.rel (!%p23_p7) target bundleno = 12 (0xc), region = 110 }
 0x51b   : > { %s2288_s23 = smov %s2285_s30 }
 0x51e   :  { %1047 = vsyncpa [#allocation3], 1 }
 0x51f   :  { %1049 = vsyncpa [#allocation3 + $0x1], 1 }
 0x520   :  { %1050 = vsyncpa [#allocation6], 1 }
 0x521   :  { %1052 = vsyncpa [#allocation6 + $0x1], 1 }
 0x522   :  { %1053 = vsyncpa [#allocation9], 1 }
 0x523   :  { %1054 = vsyncpa [#allocation4], 1 }
 0x524   :  { %1056 = vsyncpa [#allocation4 + $0x1], 1 }

</bundles_post_ra>
